<compile_context>
chip_gen: v7x
topology: tpu7x:2x2x1
jax: 0.10.0
libtpu: 0.0.40
codegen_flags: <defaults>
</compile_context>

<pallas_src>
import jax
import jax.numpy as jnp
from jax.experimental import pallas as pl
from jax.experimental.pallas import tpu as pltpu

TM_MAX = 512    # row tile of A / output (<=512 keeps >=2 row tiles on v7x for big graphs)
TK_MAX = 2048   # reduction tile (columns of A / rows of Hs)


def _round_up(v, m):
    return (v + m - 1) // m * m


def _pow2_tile(n128, cap):
    """Largest 128 * 2^k that is <= min(cap, n128)."""
    t = 128
    while t * 2 <= min(cap, n128):
        t *= 2
    return t


def gcn_kernel(a_ref, h_ref, dr_ref, b_ref, o_ref):
    """One (row tile i, reduction tile k) step of
         out = relu( dr * ((A+I) @ Hs) + b ),   Hs = (X @ W) * dc

    a_ref : (TM, TK)   bf16  raw (A + I) tile
    h_ref : (TK, Hp)   bf16  column-normalized activations Hs
    dr_ref: (TM, 1)    f32   D^-1/2 for the row tile
    b_ref : (1, Hp)    f32   resident bias
    o_ref : (TM, Hp)   f32   output tile (resident across k -> accumulator)
    """
    k = pl.program_id(1)

    @pl.when(k == 0)
    def _():
        o_ref[...] = jnp.zeros_like(o_ref)

    # bf16 MXU inputs, f32 accumulation directly into the resident output block.
    o_ref[...] += jnp.dot(a_ref[...], h_ref[...],
                          preferred_element_type=jnp.float32)

    @pl.when(k == pl.num_programs(1) - 1)
    def _():
        # Row-side D^-1/2, bias and ReLU fused in the f32 epilogue (lane-dense store).
        o_ref[...] = jnp.maximum(o_ref[...] * dr_ref[...] + b_ref[...], 0.0)


def improved_gcn_forward(x, edge_index, weight_t, bias):
    """x: [N, F] f32, edge_index: [2, E] int32 (src, dst),
    weight_t: [F, H] f32 (transposed torch GCNConv.lin.weight), bias: [H] f32."""
    n, _ = x.shape
    hdim = weight_t.shape[1]
    h_pad = _round_up(hdim, 128)

    n128 = _round_up(n, 128)
    tm = _pow2_tile(n128, TM_MAX)
    tk = _pow2_tile(n128, TK_MAX)
    n_rows = _round_up(n, tm)   # destination (output) rows of A
    n_cols = _round_up(n, tk)   # source (reduction) columns of A

    src, dst = edge_index[0], edge_index[1]
    loops = jnp.arange(n, dtype=edge_index.dtype)
    rows = jnp.concatenate([dst, loops])
    cols = jnp.concatenate([src, loops])

    # (A + I) built directly in padded bf16 (entries are small ints -> exact), one scatter.
    a_p = jnp.zeros((n_rows, n_cols), jnp.bfloat16).at[rows, cols].add(1.0)

    # deg_i = 1 + #incoming edges == row sums of (A+I); no N^2 pass needed.
    deg = jnp.ones((n,), jnp.float32).at[dst].add(1.0)
    dinv = jax.lax.rsqrt(deg)

    # H = X @ W computed once; fold the column-side D^-1/2 into its rows, cast to bf16.
    hs = (x.astype(jnp.float32) @ weight_t.astype(jnp.float32)) * dinv[:, None]
    hs_p = jnp.zeros((n_cols, h_pad), jnp.bfloat16).at[:n, :hdim].set(
        hs.astype(jnp.bfloat16))

    dr_p = jnp.zeros((n_rows, 1), jnp.float32).at[:n, 0].set(dinv)
    b_p = jnp.zeros((1, h_pad), jnp.float32).at[0, :hdim].set(
        bias.reshape(-1).astype(jnp.float32))

    grid = (n_rows // tm, n_cols // tk)   # reduction axis last

    # Double-buffered VMEM footprint: A + Hs + out + dr (+ bias). Keep the limit
    # comfortably below v7x's 64 MiB physical VMEM while giving the pipeline headroom.
    vmem_bytes = 2 * (tm * tk * 2 + tk * h_pad * 2 + tm * h_pad * 4 + tm * 4) + h_pad * 4
    vmem_limit = int(min(max(2 * vmem_bytes, 16 * 1024 * 1024), 48 * 1024 * 1024))

    out = pl.pallas_call(
        gcn_kernel,
        out_shape=jax.ShapeDtypeStruct((n_rows, h_pad), jnp.float32),
        grid=grid,
        in_specs=[
            pl.BlockSpec((tm, tk), lambda i, k: (i, k)),      # (A + I) tile
            pl.BlockSpec((tk, h_pad), lambda i, k: (k, 0)),   # Hs tile
            pl.BlockSpec((tm, 1), lambda i, k: (i, 0)),       # D^-1/2 row scale
            pl.BlockSpec((1, h_pad), lambda i, k: (0, 0)),    # bias (resident)
        ],
        out_specs=pl.BlockSpec((tm, h_pad), lambda i, k: (i, 0)),
        compiler_params=pltpu.CompilerParams(
            dimension_semantics=("parallel", "arbitrary"),
            vmem_limit_bytes=vmem_limit,
        ),
        cost_estimate=pl.CostEstimate(
            flops=2 * n_rows * n_cols * h_pad,
            transcendentals=0,
            bytes_accessed=2 * n_rows * n_cols
                           + 2 * n_cols * h_pad * (n_rows // tm)
                           + 4 * n_rows * h_pad + 4 * n_rows + 4 * h_pad,
        ),
    )(a_p, hs_p, dr_p, b_p)

    return out[:n, :hdim]


if __name__ == "__main__":
    # Small synthetic graph consistent with the module's forward(x, edge_index).
    num_nodes = 16
    in_channels = 8
    hidden_channels = 32
    num_edges = 40

    key = jax.random.PRNGKey(0)
    k_x, k_src, k_dst, k_w = jax.random.split(key, 4)

    x = jax.random.normal(k_x, (num_nodes, in_channels), dtype=jnp.float32)
    src = jax.random.randint(k_src, (num_edges,), 0, num_nodes, dtype=jnp.int32)
    dst = jax.random.randint(k_dst, (num_edges,), 0, num_nodes, dtype=jnp.int32)
    edge_index = jnp.stack([src, dst], axis=0)  # [2, E]

    # Glorot-style init for GCNConv.lin.weight ([H, F_in]) -> stored transposed.
    limit = (6.0 / (in_channels + hidden_channels)) ** 0.5
    weight_t = jax.random.uniform(
        k_w, (in_channels, hidden_channels), dtype=jnp.float32,
        minval=-limit, maxval=limit)
    bias = jnp.zeros((hidden_channels,), dtype=jnp.float32)  # GCNConv bias init

    out = improved_gcn_forward(x, edge_index, weight_t, bias)
    jax.block_until_ready(out)

    # Pure-JAX f32 reference of the same math (kernel uses bf16 A / Hs, f32 accumulation).
    loops = jnp.arange(num_nodes, dtype=jnp.int32)
    a = jnp.zeros((num_nodes, num_nodes), jnp.float32).at[
        jnp.concatenate([dst, loops]), jnp.concatenate([src, loops])].add(1.0)
    deg = a.sum(axis=1)
    dinv = jax.lax.rsqrt(deg)
    a_norm = dinv[:, None] * a * dinv[None, :]
    ref = jnp.maximum(a_norm @ (x @ weight_t) + bias[None, :], 0.0)

    assert out.shape == (num_nodes, hidden_channels)
    err = float(jnp.max(jnp.abs(out - ref)))
    assert jnp.allclose(out, ref, atol=2e-2, rtol=2e-2), err

    print("KERNEL_OK")
</pallas_src>

<mosaic_0001>
module attributes {stable_mosaic.version = 11 : i64} {
  func.func @gcn_kernel(%arg0: i32, %arg1: i32, %arg2: memref<128x128xbf16, #tpu.memory_space<vmem>>, %arg3: memref<128x128xbf16, #tpu.memory_space<vmem>>, %arg4: memref<128x1xf32, #tpu.memory_space<vmem>>, %arg5: memref<1x128xf32, #tpu.memory_space<vmem>>, %arg6: memref<128x128xf32, #tpu.memory_space<vmem>>) attributes {dimension_semantics = [#tpu.dimension_semantics<parallel>, #tpu.dimension_semantics<arbitrary>], iteration_bounds = array<i64: 1, 1>, scalar_prefetch = 0 : i64, scratch_operands = 0 : i64, tpu.core_type = #tpu.core_type<tc>, window_params = [{transform_indices = @transform_0, window_bounds = array<i64: 128, 128>}, {transform_indices = @transform_1, window_bounds = array<i64: 128, 128>}, {transform_indices = @transform_2, window_bounds = array<i64: 128, 1>}, {pipeline_mode = #tpu.pipeline_mode<synchronous>, transform_indices = @transform_3, window_bounds = array<i64: 1, 128>}, {transform_indices = @transform_4, window_bounds = array<i64: 128, 128>}]} {
    %c0_i32 = arith.constant 0 : i32
    %0 = arith.cmpi eq, %arg1, %c0_i32 : i32
    %1 = arith.extui %0 : i1 to i32
    %c0_i32_0 = arith.constant 0 : i32
    %2 = arith.cmpi ne, %1, %c0_i32_0 : i32
    scf.if %2 {
      %cst_10 = arith.constant 0.000000e+00 : f32
      %12 = vector.broadcast %cst_10 : f32 to vector<128x128xf32>
      %c0_11 = arith.constant 0 : index
      %c0_12 = arith.constant 0 : index
      %13 = vector.load %arg6[%c0_11, %c0_12] : memref<128x128xf32, #tpu.memory_space<vmem>>, vector<128x128xf32>
      tpu.vector_store %arg6[%c0_11, %c0_12], %12 {strides = array<i32>} : memref<128x128xf32, #tpu.memory_space<vmem>>, vector<128x128xf32>,
    } else {
    }
    %c0 = arith.constant 0 : index
    %c0_1 = arith.constant 0 : index
    %3 = vector.load %arg6[%c0, %c0_1] : memref<128x128xf32, #tpu.memory_space<vmem>>, vector<128x128xf32>
    %c0_2 = arith.constant 0 : index
    %c0_3 = arith.constant 0 : index
    %4 = vector.load %arg2[%c0_2, %c0_3] : memref<128x128xbf16, #tpu.memory_space<vmem>>, vector<128x128xbf16>
    %c0_4 = arith.constant 0 : index
    %c0_5 = arith.constant 0 : index
    %5 = vector.load %arg3[%c0_4, %c0_5] : memref<128x128xbf16, #tpu.memory_space<vmem>>, vector<128x128xbf16>
    %cst = arith.constant dense<0.000000e+00> : vector<128x128xf32>
    %6 = tpu.matmul %4, %5, %cst {dimension_numbers = #tpu.dot_dimension_numbers<[1], [0], [0], [1], [0, 0, 1, 1], [], []>} : vector<128x128xbf16>, vector<128x128xbf16>, vector<128x128xf32> -> vector<128x128xf32>
    %7 = arith.addf %3, %6 : vector<128x128xf32>
    %c0_6 = arith.constant 0 : index
    %c0_7 = arith.constant 0 : index
    %8 = vector.load %arg6[%c0_6, %c0_7] : memref<128x128xf32, #tpu.memory_space<vmem>>, vector<128x128xf32>
    tpu.vector_store %arg6[%c0_6, %c0_7], %7 {strides = array<i32>} : memref<128x128xf32, #tpu.memory_space<vmem>>, vector<128x128xf32>,
    %c0_i32_8 = arith.constant 0 : i32
    %9 = arith.cmpi eq, %arg1, %c0_i32_8 : i32
    %10 = arith.extui %9 : i1 to i32
    %c0_i32_9 = arith.constant 0 : i32
    %11 = arith.cmpi ne, %10, %c0_i32_9 : i32
    scf.if %11 {
      %c0_10 = arith.constant 0 : index
      %c0_11 = arith.constant 0 : index
      %12 = vector.load %arg6[%c0_10, %c0_11] : memref<128x128xf32, #tpu.memory_space<vmem>>, vector<128x128xf32>
      %c0_12 = arith.constant 0 : index
      %c0_13 = arith.constant 0 : index
      %13 = vector.load %arg4[%c0_12, %c0_13] : memref<128x1xf32, #tpu.memory_space<vmem>>, vector<128x1xf32>
      %14 = vector.broadcast %13 : vector<128x1xf32> to vector<128x128xf32>
      %15 = arith.mulf %12, %14 : vector<128x128xf32>
      %c0_14 = arith.constant 0 : index
      %c0_15 = arith.constant 0 : index
      %16 = vector.load %arg5[%c0_14, %c0_15] : memref<1x128xf32, #tpu.memory_space<vmem>>, vector<1x128xf32>
      %17 = vector.broadcast %16 : vector<1x128xf32> to vector<128x128xf32>
      %18 = arith.addf %15, %17 : vector<128x128xf32>
      %cst_16 = arith.constant 0.000000e+00 : f32
      %19 = vector.broadcast %cst_16 : f32 to vector<128x128xf32>
      %20 = arith.maximumf %18, %19 : vector<128x128xf32>
      %c0_17 = arith.constant 0 : index
      %c0_18 = arith.constant 0 : index
      %21 = vector.load %arg6[%c0_17, %c0_18] : memref<128x128xf32, #tpu.memory_space<vmem>>, vector<128x128xf32>
      tpu.vector_store %arg6[%c0_17, %c0_18], %20 {strides = array<i32>} : memref<128x128xf32, #tpu.memory_space<vmem>>, vector<128x128xf32>,
    } else {
    }
    return
  }
  func.func @transform_0(%arg0: i32, %arg1: i32) -> (i32, i32) {
    %c0_i32 = arith.constant 0 : i32
    return %arg0, %arg1 : i32, i32
  }
  func.func @transform_1(%arg0: i32, %arg1: i32) -> (i32, i32) {
    %c0_i32 = arith.constant 0 : i32
    %c0_i32_0 = arith.constant 0 : i32
    return %arg1, %c0_i32 : i32, i32
  }
  func.func @transform_2(%arg0: i32, %arg1: i32) -> (i32, i32) {
    %c0_i32 = arith.constant 0 : i32
    %c0_i32_0 = arith.constant 0 : i32
    return %arg0, %c0_i32 : i32, i32
  }
  func.func @transform_3(%arg0: i32, %arg1: i32) -> (i32, i32) {
    %c0_i32 = arith.constant 0 : i32
    %c0_i32_0 = arith.constant 0 : i32
    %c0_i32_1 = arith.constant 0 : i32
    return %c0_i32, %c0_i32_0 : i32, i32
  }
  func.func @transform_4(%arg0: i32, %arg1: i32) -> (i32, i32) {
    %c0_i32 = arith.constant 0 : i32
    %c0_i32_0 = arith.constant 0 : i32
    return %arg0, %c0_i32 : i32, i32
  }
}

</mosaic_0001>

<bundles_post_ra>
// kernel: tpu_custom_call.1
= control target key start
LH: loop header
LB: loop body
LE: loop exit
PB: predicated region body
PF: predicated region fallthrough
CT: control target
= control target key end

     0   :  { %v642_v2 = vmov 0   ;;  %s809_s0 = inlined_call_operand.vmem [shape: bf16[128,128], index: 0, kind: input, shape index: {}]   ;;  %s810_s1 = inlined_call_operand.vmem [shape: bf16[128,128], index: 1, kind: input, shape index: {}]   ;;  %s811_s2 = inlined_call_operand.vmem [shape: f32[128,1], index: 2, kind: input, shape index: {}]   ;;  %s812_s3 = inlined_call_operand.vmem [shape: f32[1,128], index: 3, kind: input, shape index: {}]   ;;  %s813_s4 = inlined_call_operand.hbm [shape: f32[128,128], index: 4, kind: output, shape index: {}]  }
   0x1   :  { %v602_v0 = vld [vmem:[%s810_s1] sm:$0xff]   ;;  %v603_v1 = vld [vmem:[%s810_s1 + $0x8] sm:$0xff]   ;;  %601 = vset.pattern.permute.xlu1 %v642_v2  ;;  %600 = vset.pattern.permute.xlu0 %v642_v2  ;;  %v604_v3 = vld [vmem:[%s810_s1 + $0x10] sm:$0xff]  }
   0x2   :  { %547 = vmatprep.subr.bf16.mxu0 %v602_v0  ;;  %579 = vmatprep.subr.bf16.mxu1 %v602_v0  ;;  %v605_v4 = vld [vmem:[%s810_s1 + $0x18] sm:$0xff]   ;;  %v610_v5 = vld [vmem:[%s809_s0] sm:$0xff]   ;;  %v607_v8 = vld [vmem:[%s810_s1 + $0x28] sm:$0xff]  }
   0x3   :  { %548 = vmatpush3.bf16.msra.mxu0 %v602_v0  ;;  %587 = vmatpush3.bf16.msra.mxu1 %v602_v0  ;;  %v611_v6 = vld [vmem:[%s809_s0 + $0x20] sm:$0xff]   ;;  %v333_v9 = vld [vmem:[%s811_s2 + $0x10] sm:$0xff]  ;;  %v334_v11 = vld [vmem:[%s811_s2 + $0x18] sm:$0xff] }
   0x4   :  { %549 = vmatprep.subr.bf16.mxu0 %v603_v1  ;;  %580 = vmatprep.subr.bf16.mxu1 %v603_v1  ;;  %v606_v7 = vld [vmem:[%s810_s1 + $0x20] sm:$0xff]   ;;  %v332_v12 = vld [vmem:[%s811_s2 + $0x8] sm:$0xff]  ;;  %v608_v13 = vld [vmem:[%s810_s1 + $0x30] sm:$0xff]  }
   0x5   :  { %563 = vmatprep.mubr.bf16.mxu0 %v610_v5  ;;  %571 = vmatprep.mubr.bf16.mxu1 %v611_v6  ;;  %v331_v10 = vld [vmem:[%s811_s2] sm:$0xff] }
   0x6   :  { %359 = vperm.xlu1 %601, %v333_v9   ;;  %349 = vperm.xlu0 %600, %v331_v10  }
   0x7   :  { %550 = vmatpush3.bf16.msra.mxu0 %v603_v1  ;;  %588 = vmatpush3.bf16.msra.mxu1 %v603_v1 }
   0x8   :  { %551 = vmatprep.subr.bf16.mxu0 %v604_v3  ;;  %581 = vmatprep.subr.bf16.mxu1 %v604_v3 }
   0xa   :  { %364 = vperm.xlu1 %601, %v334_v11   ;;  %354 = vperm.xlu0 %600, %v332_v12  }
   0xb   :  { %552 = vmatpush3.bf16.msra.mxu0 %v604_v3  ;;  %589 = vmatpush3.bf16.msra.mxu1 %v604_v3 }
   0xc   :  { %553 = vmatprep.subr.bf16.mxu0 %v605_v4  ;;  %582 = vmatprep.subr.bf16.mxu1 %v605_v4 }
   0xf   :  { %554 = vmatpush3.bf16.msra.mxu0 %v605_v4  ;;  %590 = vmatpush3.bf16.msra.mxu1 %v605_v4 }
  0x10   :  { %555 = vmatprep.subr.bf16.mxu0 %v606_v7  ;;  %583 = vmatprep.subr.bf16.mxu1 %v606_v7 }
  0x13   :  { %556 = vmatpush3.bf16.msra.mxu0 %v606_v7  ;;  %591 = vmatpush3.bf16.msra.mxu1 %v606_v7 }
  0x14   :  { %557 = vmatprep.subr.bf16.mxu0 %v607_v8  ;;  %584 = vmatprep.subr.bf16.mxu1 %v607_v8 }
  0x15   :  { %9 = vsyncpa [#allocation3], 0  ;;  %v336_v14 = vld [vmem:[%s811_s2 + $0x28] sm:$0xff]  ;;  %v335_v15 = vld [vmem:[%s811_s2 + $0x20] sm:$0xff] }
  0x16   :  { %v609_v16 = vld [vmem:[%s810_s1 + $0x38] sm:$0xff]   ;;  %374 = vperm.xlu1 %601, %v336_v14   ;;  %369 = vperm.xlu0 %600, %v335_v15   ;;  %v337_v18 = vld [vmem:[%s811_s2 + $0x30] sm:$0xff]  ;;  %v612_v19 = vld [vmem:[%s809_s0 + $0x8] sm:$0xff]  }
  0x17   :  { %558 = vmatpush3.bf16.msra.mxu0 %v607_v8  ;;  %592 = vmatpush3.bf16.msra.mxu1 %v607_v8  ;;  %v338_v17 = vld [vmem:[%s811_s2 + $0x38] sm:$0xff]  ;;  %v613_v20 = vld [vmem:[%s809_s0 + $0x28] sm:$0xff]   ;;  %v339_v22 = vld [vmem:[%s811_s2 + $0x40] sm:$0xff] }
  0x18   :  { %559 = vmatprep.subr.bf16.mxu0 %v608_v13  ;;  %585 = vmatprep.subr.bf16.mxu1 %v608_v13  ;;  %v340_v21 = vld [vmem:[%s811_s2 + $0x48] sm:$0xff]  ;;  %v614_v23 = vld [vmem:[%s809_s0 + $0x10] sm:$0xff]   ;;  %v342_v25 = vld [vmem:[%s811_s2 + $0x58] sm:$0xff] }
  0x19   :  { %v615_v24 = vld [vmem:[%s809_s0 + $0x30] sm:$0xff]   ;;  %v616_v27 = vld [vmem:[%s809_s0 + $0x18] sm:$0xff]   ;;  %v344_v29 = vld [vmem:[%s811_s2 + $0x68] sm:$0xff] }
  0x1a   :  { %384 = vperm.xlu1 %601, %v338_v17   ;;  %379 = vperm.xlu0 %600, %v337_v18   ;;  %v341_v26 = vld [vmem:[%s811_s2 + $0x50] sm:$0xff]  ;;  %v617_v28 = vld [vmem:[%s809_s0 + $0x38] sm:$0xff]   ;;  %v343_v30 = vld [vmem:[%s811_s2 + $0x60] sm:$0xff] }
  0x1b   :  { %560 = vmatpush3.bf16.msra.mxu0 %v608_v13  ;;  %593 = vmatpush3.bf16.msra.mxu1 %v608_v13  ;;  %v346_v31 = vld [vmem:[%s811_s2 + $0x78] sm:$0xff]  ;;  %v345_v32 = vld [vmem:[%s811_s2 + $0x70] sm:$0xff]  ;;  %v776_v50 = vld [vmem:[%s812_s3] ss:$0 sm:$0xff]  ;;  %s643_s3 = smov [#allocation2]  }
  0x1c   :  { %561 = vmatprep.subr.bf16.mxu0 %v609_v16  ;;  %586 = vmatprep.subr.bf16.mxu1 %v609_v16  ;;  %s503_s26 = sshll.u32 %s643_s3, 4  ;;  %s504_s26 = int_to_ptr.vmem [resolvable:$true] %s503_s26 }
  0x1d   :  { %s618_s1 = scalar_lea.vmem %s504_s26, 2048  ;;  %p623_p1 = scmp.lt.s32.totalorder %s504_s26, %s504_s26 }
  0x1e   :  { %394 = vperm.xlu1 %601, %v340_v21   ;;  %389 = vperm.xlu0 %600, %v339_v22   ;;  %p619_p0 = scmp.ne.s32.totalorder %s504_s26, %s618_s1  ;;  %p624_p2 = scmp.lt.s32.totalorder %s618_s1, %s618_s1 }
  0x1f   :  { %562 = vmatpush3.bf16.msra.mxu0 %v609_v16  ;;  %594 = vmatpush3.bf16.msra.mxu1 %v609_v16 }
  0x20   :  { %p625_p3 = por %p624_p2, %p623_p1 }
  0x22   :  { %564 = vmatmul.mubr.bf16.vlgmr.msra.gmra.mrb[0].mxu0 %v612_v19  ;;  %572 = vmatmul.mubr.bf16.vlgmr.msra.gmra.mrb[0].mxu1 %v613_v20  ;;  %p626_p4 = pnand %p625_p3, %p619_p0 }
  0x23   :  { %567 = vmatprep.mubr.bf16.mxu0 %v614_v23  ;;  %575 = vmatprep.mubr.bf16.mxu1 %v615_v24 }
  0x24   :  { %404 = vperm.xlu1 %601, %v342_v25   ;;  %399 = vperm.xlu0 %600, %v341_v26  }
  0x28   :  { %414 = vperm.xlu1 %601, %v344_v29   ;;  %409 = vperm.xlu0 %600, %v343_v30  }
  0x2a   :  { %568 = vmatmul.mubr.bf16.gmra.mrb[4].mxu0 %v616_v27  ;;  %576 = vmatmul.mubr.bf16.gmra.mrb[4].mxu1 %v617_v28 }
  0x2c   :  { %424 = vperm.xlu1 %601, %v346_v31   ;;  %419 = vperm.xlu0 %600, %v345_v32  }
  0x85   :  { %v350_v33 = vpop.permute.xlu0 %349  ;;  %v360_v34 = vpop.permute.xlu1 %359 }
  0x89   :  { %v355_v35 = vpop.permute.xlu0 %354  ;;  %v365_v36 = vpop.permute.xlu1 %364 }
  0x95   :  { %v767_v37 = vpop.permute.xlu0 %369  ;;  %v769_v38 = vpop.permute.xlu1 %374 }
  0x99   :  { %v380_v39 = vpop.permute.xlu0 %379  ;;  %v771_v40 = vpop.permute.xlu1 %384 }
  0x9d   :  { %v390_v41 = vpop.permute.xlu0 %389  ;;  %v395_v42 = vpop.permute.xlu1 %394 }
  0xa3   :  { %v400_v43 = vpop.permute.xlu0 %399  ;;  %v405_v44 = vpop.permute.xlu1 %404 }
  0xa7   :  { %v410_v45 = vpop.permute.xlu0 %409  ;;  %v415_v63 = vpop.permute.xlu1 %414 }
  0xab   :  { %v420_v4 = vpop.permute.xlu0 %419  ;;  %v425_v27 = vpop.permute.xlu1 %424 }
  0xf5   :  { %v565_v46 = vpop.f32.mrb[0].mxu0  ;;  %v573_v47 = vpop.f32.mrb[0].mxu1 }
  0xf6   :  { %v217_v48 = vpop.f32.mrb[1].mxu0  ;;  %v249_v49 = vpop.f32.mrb[1].mxu1  ;;  %v429_v53 = vmul.f32 %v565_v46, %v360_v34  ;;  %v437_v54 = vmul.f32 %v573_v47, %v400_v43 }
  0xf7   :  { %v566_v51 = vpop.f32.mrb[2].mxu0  ;;  %v574_v52 = vpop.f32.mrb[2].mxu1  ;;  %v427_v57 = vmul.f32 %v350_v33, %v217_v48  ;;  %v435_v58 = vmul.f32 %v390_v41, %v249_v49 }
  0xf8   :  { %v220_v55 = vpop.f32.mrb[3].mxu0  ;;  %v252_v56 = vpop.f32.mrb[3].mxu1  ;;  %v452_v59 = vadd.f32 %v776_v50, %v429_v53  ;;  %v460_v60 = vadd.f32 %v776_v50, %v437_v54  ;;  %v430_v61 = vmul.f32 %v566_v51, %v365_v36  ;;  %v438_v62 = vmul.f32 %v574_v52, %v405_v44 }
  0xf9   :  { %v450_v0 = vadd.f32 %v776_v50, %v427_v57  ;;  %v458_v1 = vadd.f32 %v776_v50, %v435_v58  ;;  %v428_v2 = vmul.f32 %v355_v35, %v220_v55  ;;  %v436_v3 = vmul.f32 %v395_v42, %v252_v56 }
  0xfa   :  { %v468_v5 = vmax.f32 %v452_v59, 0.0  ;;  %v476_v6 = vmax.f32 %v460_v60, 0.0  ;;  %v453_v7 = vadd.f32 %v776_v50, %v430_v61  ;;  %v461_v8 = vadd.f32 %v776_v50, %v438_v62 }
  0xfb   :  { %v466_v9 = vmax.f32 %v450_v0, 0.0  ;;  %v474_v10 = vmax.f32 %v458_v1, 0.0  ;;  %v451_v11 = vadd.f32 %v776_v50, %v428_v2  ;;  %v459_v12 = vadd.f32 %v776_v50, %v436_v3 }
  0xfc   :  { %484 = vst [vmem:[#allocation2 + $0x10] sm:$0xff] %v468_v5  ;;  %492 = vst [vmem:[#allocation2 + $0x50] sm:$0xff] %v476_v6  ;;  %v469_v15 = vmax.f32 %v453_v7, 0.0  ;;  %v477_v16 = vmax.f32 %v461_v8, 0.0 }
  0xfd   :  { %v569_v13 = vpop.f32.mrb[4].mxu0  ;;  %v577_v14 = vpop.f32.mrb[4].mxu1  ;;  %482 = vst [vmem:[#allocation2] sm:$0xff] %v466_v9  ;;  %490 = vst [vmem:[#allocation2 + $0x40] sm:$0xff] %v474_v10  ;;  %v467_v19 = vmax.f32 %v451_v11, 0.0  ;;  %v475_v20 = vmax.f32 %v459_v12, 0.0 }
  0xfe   :  { %v233_v17 = vpop.f32.mrb[5].mxu0  ;;  %v265_v18 = vpop.f32.mrb[5].mxu1  ;;  %485 = vst [vmem:[#allocation2 + $0x18] sm:$0xff] %v469_v15  ;;  %493 = vst [vmem:[#allocation2 + $0x58] sm:$0xff] %v477_v16  ;;  %v433_v23 = vmul.f32 %v569_v13, %v380_v39  ;;  %v441_v24 = vmul.f32 %v577_v14, %v420_v4 }
  0xff   :  { %v570_v21 = vpop.f32.mrb[6].mxu0  ;;  %v578_v22 = vpop.f32.mrb[6].mxu1  ;;  %483 = vst [vmem:[#allocation2 + $0x8] sm:$0xff] %v467_v19  ;;  %491 = vst [vmem:[#allocation2 + $0x48] sm:$0xff] %v475_v20  ;;  %v431_v28 = vmul.f32 %v767_v37, %v233_v17  ;;  %v439_v29 = vmul.f32 %v410_v45, %v265_v18 }
 0x100   :  { %v236_v25 = vpop.f32.mrb[7].mxu0  ;;  %v268_v26 = vpop.f32.mrb[7].mxu1  ;;  %v456_v30 = vadd.f32 %v776_v50, %v433_v23  ;;  %v464_v31 = vadd.f32 %v776_v50, %v441_v24  ;;  %v434_v32 = vmul.f32 %v570_v21, %v771_v40  ;;  %v442_v33 = vmul.f32 %v578_v22, %v425_v27 }
 0x101   :  { %v454_v34 = vadd.f32 %v776_v50, %v431_v28  ;;  %v462_v35 = vadd.f32 %v776_v50, %v439_v29  ;;  %v432_v36 = vmul.f32 %v769_v38, %v236_v25  ;;  %v440_v39 = vmul.f32 %v415_v63, %v268_v26 }
 0x102   :  { %v472_v41 = vmax.f32 %v456_v30, 0.0  ;;  %v480_v42 = vmax.f32 %v464_v31, 0.0  ;;  %v457_v37 = vadd.f32 %v776_v50, %v434_v32  ;;  %v465_v43 = vadd.f32 %v776_v50, %v442_v33 }
 0x103   :  { %v470_v44 = vmax.f32 %v454_v34, 0.0  ;;  %v478_v45 = vmax.f32 %v462_v35, 0.0  ;;  %v455_v40 = vadd.f32 %v776_v50, %v432_v36  ;;  %v463_v46 = vadd.f32 %v776_v50, %v440_v39 }
 0x104   :  { %488 = vst [vmem:[#allocation2 + $0x30] sm:$0xff] %v472_v41  ;;  %496 = vst [vmem:[#allocation2 + $0x70] sm:$0xff] %v480_v42  ;;  %v473_v47 = vmax.f32 %v457_v37, 0.0  ;;  %v481_v48 = vmax.f32 %v465_v43, 0.0 }
 0x105   :  { %486 = vst [vmem:[#allocation2 + $0x20] sm:$0xff] %v470_v44  ;;  %494 = vst [vmem:[#allocation2 + $0x60] sm:$0xff] %v478_v45  ;;  %v471_v38 = vmax.f32 %v455_v40, 0.0  ;;  %v479_v49 = vmax.f32 %v463_v46, 0.0 }
 0x106   :  { %489 = vst [vmem:[#allocation2 + $0x38] sm:$0xff] %v473_v47  ;;  %497 = vst [vmem:[#allocation2 + $0x78] sm:$0xff] %v481_v48 }
 0x107   :  { %487 = vst [vmem:[#allocation2 + $0x28] sm:$0xff] %v471_v38  ;;  %495 = vst [vmem:[#allocation2 + $0x68] sm:$0xff] %v479_v49 }
 0x108   :  { %629 = shalt.err (!%p626_p4)
}
 0x109   :  { %s630_s29 = scalar_lea.hbm %s813_s4, 2048 }
 0x10a   :  { %p631_p5 = scmp.ne.s32.totalorder %s813_s4, %s630_s29  ;;  %p634_p6 = scmp.lt.u32.totalorder %s630_s29, %s813_s4 }
 0x10c   :  { %p636_p7 = pnand %p634_p6, %p631_p5 }
 0x10e   :  { %639 = shalt.err (!%p636_p7)
}
 0x10f   :  { %s644_s8 = smov 128   ;;  %s645_s9 = smov 8  }
 0x110   :  { %509 = dma.vmem_to_hbm [thread:$0]  %s504_s26, 2048, %s813_s4, [#allocation3], %s644_s8, %s644_s8, %s645_s9  }
 0x111   :  { %640 = dma.done.wait [#allocation3], 2048  }
 0x112   :  { %641 = vsyncadd [#allocation3], 4294965248 }
 0x113   :  { %513 = vsyncpa [#allocation3], 1 }

</bundles_post_ra>
